<compile_context>
chip_gen: v6e
topology: v6e:2x2x1
jax: 0.10.0
libtpu: 0.0.40
codegen_flags: <defaults>
</compile_context>

<pallas_src>
import functools

import jax
import jax.numpy as jnp
from jax.experimental import pallas as pl
from jax.experimental.pallas import tpu as pltpu

_SUBLANE = 8
_LANE = 128


def _rows_kernel(x_ref, w_ref, b_ref, o_ref):
    # x_ref: (tile_M, F)  w_ref: (F, 2C)  b_ref: (1, 2C)  o_ref: (tile_M, 2C)
    y = jnp.dot(x_ref[...], w_ref[...], preferred_element_type=jnp.float32)
    o_ref[...] = (y + b_ref[...]).astype(o_ref.dtype)  # single lane-dense store


def _stacked_kernel(x_ref, w_ref, b_ref, o_ref):
    # Direct-write path, used only when C % 128 == 0 (lane-aligned split,
    # unmasked stores).  x_ref: (tile_S, F)  o_ref: (2, tile_S, C)
    c = o_ref.shape[-1]
    y = jnp.dot(x_ref[...], w_ref[...], preferred_element_type=jnp.float32)
    y = (y + b_ref[...]).astype(o_ref.dtype)
    o_ref[0] = y[:, :c]      # actions
    o_ref[1] = y[:, c:]      # actions_down


def _pick_tile_rows(m_rows, f, itemsize, budget_bytes=4 << 20, min_steps=2):
    """Rows per grid step, sized from a VMEM byte budget for the x tile.

    Multiple of 8 (sublane), capped so the grid has >= min_steps steps when
    the row count allows it (keeps both v7x TensorCores busy).  Never returns
    a row count whose tile exceeds the budget.
    """
    cap = budget_bytes // max(1, f * itemsize)
    cap = max(_SUBLANE, (cap // _SUBLANE) * _SUBLANE)
    if min_steps > 1 and m_rows >= min_steps * _SUBLANE:
        per_step = ((m_rows // min_steps) // _SUBLANE) * _SUBLANE
        cap = min(cap, max(_SUBLANE, per_step))
    if m_rows <= cap:
        return m_rows                       # full extent: always a legal block
    for t in range(cap, _SUBLANE - 1, -_SUBLANE):
        if m_rows % t == 0:
            return t                        # exact divisor -> no ragged block
    return cap                              # ragged final block; Pallas masks it


def _vmem_limit_bytes(tile_rows, f, two_c, x_item, w_item, o_item):
    need = (2 * tile_rows * f * x_item            # double-buffered x tiles
            + 2 * tile_rows * two_c * o_item      # double-buffered out tiles
            + 2 * (f * two_c * w_item + two_c * 4))   # resident w / b buffers
    # generous slack for compiler scratch, never above v7x's 64 MiB physical.
    return int(min(64 << 20, max(need + (4 << 20), 8 << 20)))


def fuse_pred_head_params(w1, b1, w2, b2):
    """Fuse the two Linear layers ONCE (init time): x @ [w1 | w2] + [b1 | b2]."""
    w_cat = jnp.concatenate([w1, w2], axis=1)                      # (F, 2C)
    b_cat = jnp.concatenate([b1, b2]).reshape(1, w_cat.shape[1])   # (1, 2C)
    return w_cat, b_cat


@functools.partial(jax.jit, static_argnames=("compute_dtype",))
def pred_head(dec_output, w_cat, b_cat, *, compute_dtype=None):
    """dec_output: (B, S, F); w_cat: (F, 2C); b_cat: (1, 2C). Returns (B, 2, S, C)."""
    B, S, F = dec_output.shape
    two_c = w_cat.shape[1]
    C = two_c // 2
    out_dtype = dec_output.dtype

    x = dec_output
    w = w_cat
    if compute_dtype is not None:
        # HBM-read-bound kernel: halving x/w bytes ~ halves wall time.
        x = x.astype(compute_dtype)
        w = w.astype(compute_dtype)
    b = b_cat.astype(jnp.float32)            # bias add stays f32 in-kernel

    x_item = jnp.dtype(x.dtype).itemsize
    w_item = jnp.dtype(w.dtype).itemsize
    o_item = jnp.dtype(out_dtype).itemsize

    if C % _LANE == 0:
        # Lane-aligned split: write straight into the stacked (B, 2, S, C)
        # layout (no wrapper transpose, stores unmasked).
        tile_s = _pick_tile_rows(S, F, x_item)
        grid = (B, pl.cdiv(S, tile_s))
        cost = pl.CostEstimate(
            flops=2 * B * S * F * two_c,
            transcendentals=0,
            bytes_accessed=(B * S * F * x_item + F * two_c * w_item
                            + two_c * 4 + B * 2 * S * C * o_item),
        )
        return pl.pallas_call(
            _stacked_kernel,
            out_shape=jax.ShapeDtypeStruct((B, 2, S, C), out_dtype),
            grid=grid,
            in_specs=[
                pl.BlockSpec((pl.Squeezed(), tile_s, F), lambda bb, i: (bb, i, 0)),
                pl.BlockSpec((F, two_c), lambda bb, i: (0, 0)),
                pl.BlockSpec((1, two_c), lambda bb, i: (0, 0)),
            ],
            out_specs=pl.BlockSpec((pl.Squeezed(), 2, tile_s, C),
                                   lambda bb, i: (bb, 0, i, 0)),
            compiler_params=pltpu.CompilerParams(
                dimension_semantics=("parallel", "parallel"),
                vmem_limit_bytes=_vmem_limit_bytes(tile_s, F, two_c,
                                                   x_item, w_item, o_item),
            ),
            cost_estimate=cost,
        )(x, w, b)

    # General (small-C) path: flatten (B, S) -> M rows, lane-dense (M, 2C) slab.
    M = B * S
    x2d = x.reshape(M, F)                    # free reshape (contiguous)
    tile_m = _pick_tile_rows(M, F, x_item)
    grid = (pl.cdiv(M, tile_m),)
    cost = pl.CostEstimate(
        flops=2 * M * F * two_c,
        transcendentals=0,
        bytes_accessed=(M * F * x_item + F * two_c * w_item
                        + two_c * 4 + M * two_c * o_item),
    )
    y = pl.pallas_call(
        _rows_kernel,
        out_shape=jax.ShapeDtypeStruct((M, two_c), out_dtype),
        grid=grid,
        in_specs=[
            pl.BlockSpec((tile_m, F), lambda i: (i, 0)),
            pl.BlockSpec((F, two_c), lambda i: (0, 0)),   # resident weight
            pl.BlockSpec((1, two_c), lambda i: (0, 0)),   # resident bias
        ],
        out_specs=pl.BlockSpec((tile_m, two_c), lambda i: (i, 0)),
        compiler_params=pltpu.CompilerParams(
            dimension_semantics=("parallel",),
            vmem_limit_bytes=_vmem_limit_bytes(tile_m, F, two_c,
                                               x_item, w_item, o_item),
        ),
        cost_estimate=cost,
    )(x2d, w, b)
    # (M, 2C) -> (B, S, 2, C) -> (B, 2, S, C); stays inside the jit.
    return y.reshape(B, S, 2, C).transpose(0, 2, 1, 3)


if __name__ == "__main__":
    # Hyperparameters implied by the module (opt.brick_feature_len, opt.connect_num)
    B, S = 2, 8                  # batch, sequence length of dec_output
    brick_feature_len = 32       # F
    connect_num = 16             # C

    key = jax.random.PRNGKey(0)
    k_x, k_w1, k_b1, k_w2, k_b2 = jax.random.split(key, 5)

    dec_output = jax.random.normal(k_x, (B, S, brick_feature_len), dtype=jnp.float32)

    # nn.Linear weights are (out, in); store transposed as (in, out) for x @ W.
    scale = 1.0 / (brick_feature_len ** 0.5)
    w1 = jax.random.uniform(k_w1, (brick_feature_len, connect_num),
                            minval=-scale, maxval=scale, dtype=jnp.float32)
    b1 = jax.random.uniform(k_b1, (connect_num,),
                            minval=-scale, maxval=scale, dtype=jnp.float32)
    w2 = jax.random.uniform(k_w2, (brick_feature_len, connect_num),
                            minval=-scale, maxval=scale, dtype=jnp.float32)
    b2 = jax.random.uniform(k_b2, (connect_num,),
                            minval=-scale, maxval=scale, dtype=jnp.float32)

    # Fuse the two linears once, at "init time".
    w_cat, b_cat = fuse_pred_head_params(w1, b1, w2, b2)

    out = pred_head(dec_output, w_cat, b_cat)
    out = jax.block_until_ready(out)

    # Reference check in plain JAX (same math as the PyTorch module).
    ref = jnp.stack((dec_output @ w1 + b1, dec_output @ w2 + b2), axis=1)
    assert out.shape == (B, 2, S, connect_num), out.shape
    assert jnp.allclose(out, ref, atol=1e-5, rtol=1e-5)

    print("KERNEL_OK")
</pallas_src>

<mosaic_0001>
module attributes {stable_mosaic.version = 11 : i64} {
  func.func @_rows_kernel(%arg0: i32, %arg1: memref<8x32xf32, #tpu.memory_space<vmem>>, %arg2: memref<32x32xf32, #tpu.memory_space<vmem>>, %arg3: memref<1x32xf32, #tpu.memory_space<vmem>>, %arg4: memref<8x32xf32, #tpu.memory_space<vmem>>) attributes {dimension_semantics = [#tpu.dimension_semantics<parallel>], iteration_bounds = array<i64: 2>, scalar_prefetch = 0 : i64, scratch_operands = 0 : i64, tpu.core_type = #tpu.core_type<tc>, window_params = [{transform_indices = @transform_0, window_bounds = array<i64: 8, 32>}, {pipeline_mode = #tpu.pipeline_mode<synchronous>, transform_indices = @transform_1, window_bounds = array<i64: 32, 32>}, {pipeline_mode = #tpu.pipeline_mode<synchronous>, transform_indices = @transform_2, window_bounds = array<i64: 1, 32>}, {transform_indices = @transform_3, window_bounds = array<i64: 8, 32>}]} {
    %c0 = arith.constant 0 : index
    %c0_0 = arith.constant 0 : index
    %0 = vector.load %arg1[%c0, %c0_0] : memref<8x32xf32, #tpu.memory_space<vmem>>, vector<8x32xf32>
    %c0_1 = arith.constant 0 : index
    %c0_2 = arith.constant 0 : index
    %1 = vector.load %arg2[%c0_1, %c0_2] : memref<32x32xf32, #tpu.memory_space<vmem>>, vector<32x32xf32>
    %cst = arith.constant dense<0.000000e+00> : vector<8x32xf32>
    %2 = tpu.matmul %0, %1, %cst {dimension_numbers = #tpu.dot_dimension_numbers<[1], [0], [0], [1], [0, 0, 1, 1], [], []>} : vector<8x32xf32>, vector<32x32xf32>, vector<8x32xf32> -> vector<8x32xf32>
    %c0_3 = arith.constant 0 : index
    %c0_4 = arith.constant 0 : index
    %3 = vector.load %arg3[%c0_3, %c0_4] : memref<1x32xf32, #tpu.memory_space<vmem>>, vector<1x32xf32>
    %4 = vector.broadcast %3 : vector<1x32xf32> to vector<8x32xf32>
    %5 = arith.addf %2, %4 : vector<8x32xf32>
    %c0_5 = arith.constant 0 : index
    %c0_6 = arith.constant 0 : index
    %6 = vector.load %arg4[%c0_5, %c0_6] : memref<8x32xf32, #tpu.memory_space<vmem>>, vector<8x32xf32>
    tpu.vector_store %arg4[%c0_5, %c0_6], %5 {strides = array<i32>} : memref<8x32xf32, #tpu.memory_space<vmem>>, vector<8x32xf32>,
    return
  }
  func.func @transform_0(%arg0: i32) -> (i32, i32) {
    %c0_i32 = arith.constant 0 : i32
    %c0_i32_0 = arith.constant 0 : i32
    return %arg0, %c0_i32 : i32, i32
  }
  func.func @transform_1(%arg0: i32) -> (i32, i32) {
    %c0_i32 = arith.constant 0 : i32
    %c0_i32_0 = arith.constant 0 : i32
    %c0_i32_1 = arith.constant 0 : i32
    return %c0_i32, %c0_i32_0 : i32, i32
  }
  func.func @transform_2(%arg0: i32) -> (i32, i32) {
    %c0_i32 = arith.constant 0 : i32
    %c0_i32_0 = arith.constant 0 : i32
    %c0_i32_1 = arith.constant 0 : i32
    return %c0_i32, %c0_i32_0 : i32, i32
  }
  func.func @transform_3(%arg0: i32) -> (i32, i32) {
    %c0_i32 = arith.constant 0 : i32
    %c0_i32_0 = arith.constant 0 : i32
    return %arg0, %c0_i32 : i32, i32
  }
}

</mosaic_0001>

<bundles_post_ra>
// kernel: pred_head.1
= control target key start
LH: loop header
LB: loop body
LE: loop exit
PB: predicated region body
PF: predicated region fallthrough
CT: control target
= control target key end

     0   :  { %8 = vsyncpa [#allocation3], 0  ;;  %s687_s0 = inlined_call_operand.hbm [shape: f32[16,32], index: 0, kind: input, shape index: {}]   ;;  %s688_s1 = inlined_call_operand.hbm [shape: f32[32,32], index: 1, kind: input, shape index: {}]   ;;  %s689_s2 = inlined_call_operand.vmem [shape: f32[1,32], index: 2, kind: input, shape index: {}]   ;;  %s690_s3 = inlined_call_operand.vmem [shape: f32[16,32], index: 3, kind: output, shape index: {}]  }
   0x1   :  { %10 = vsyncpa [#allocation3 + $0x1], 0 }
   0x2   :  { %11 = vsyncpa [#allocation5], 0  ;;  %s567_s12 = smov 0   ;;  %s569_s13 = smov 0  }
   0x3   :  { %s571_s14 = smov 0   ;;  %s573_s15 = smov 0  }
   0x4 LB: > { %s586_s16 = sadd.s32 4294967295, %s539_s15   ;;  %p37_p0 = scmp.ne.s32.totalorder %s531_s13, %s527_s12  ;;  %s539_s15 = sphi %s573_s15, %s705_s15   ;;  %s535_s14 = sphi %s571_s14, %s704_s14   ;;  %s531_s13 = sphi %s569_s13, %s703_s13   ;;  %s527_s12 = sphi %s567_s12, %s702_s12  }
   0x5   : > { %p691_p1 = scmp.eq.s32.totalorder %s586_s16, 0  ;;  %p364_p2 = scmp.ge.s32.totalorder %s539_s15, 1 }
   0x6   : > { %p116_p3 = scmp.lt.s32.totalorder %s539_s15, 3  ;;  %s541_s19 = smov [#allocation4]  }
   0x7   : > { %p594_p4 = por %p691_p1, %p37_p0  ;;  %s128_s20 = sshll.u32 %s541_s19, 4  ;;  %s129_s20 = int_to_ptr.vmem [resolvable:$true] %s128_s20 }
   0x8   : > { %p598_p5 = pnand %p364_p2, %p116_p3  ;;  %s611_s22 = sadd.s32 1, %s539_s15  }
   0x9   : > { %s694_s17 = scalar_select %p594_p4, 1, 0 }
   0xa   : > { %s695_s18 = scalar_select %p598_p5, 1, 0 }
   0xb   : > { %p399_p6 = pneg %p598_p5  ;;  %s24_s23 = sadd.s32 1, %s535_s14 }
   0xc   : > { %s21_s24 = ssub.s32 %s539_s15, %s611_s22  ;;  %s458_s25 = scalar_lea.vmem %s129_s20, 512 }
   0xd   : > { %p606_p7 = pnand %p399_p6, %p691_p1  ;;  %p459_p9 = scmp.ne.s32.totalorder %s129_s20, %s458_s25 }
   0xe   : > { %p466_p12 = scmp.lt.s32.totalorder %s129_s20, %s129_s20  ;;  %p467_p13 = scmp.lt.s32.totalorder %s458_s25, %s458_s25 }
   0xf   : > { %p449_p8 = pneg %p606_p7 }
  0x10   : > { %p468_p0 = por %p467_p13, %p466_p12 }
  0x11   : > { %p461_p10 = pnand %p459_p9, %p449_p8 }
  0x13   : > { %p462_p11 = pneg %p461_p10 }
  0x15   : > { %p469_p2 = pnand %p468_p0, %p462_p11 }
  0x17   : > { %472 = shalt.err (!%p469_p2)
}
  0x18   : > { %s542_s26 = smov 128   ;;  %s543_s27 = smov 8  }
  0x19   : > { %402 = dma.hbm_to_vmem [thread:$0]  (!%p606_p7), %s688_s1, 512, %s129_s20, [#allocation5], %s542_s26, %s542_s26, %s543_s27  }
  0x1a   : > { %p22_p3 = scmp.eq.s32.totalorder %s21_s24, 0  ;;  %p31_p6 = scmp.ne.s32.totalorder %s535_s14, %s531_s13 }
  0x1b   : > { %p32_p8 = scmp.eq.s32.totalorder %s539_s15, 0  ;;  %p408_p9 = scmp.lt.s32.totalorder %s539_s15, 2 }
  0x1c   : > { %s628_s30 = scalar_select %p22_p3, %s535_s14, %s24_s23  }
  0x1d   : > { %p33_p10 = por %p32_p8, %p31_p6  ;;  %s145_s4 = sand.u32 1, %s535_s14  }
  0x1e   : > { %s367_s5 = sshll.u32 %s145_s4, 3  ;;  %s368_s6 = sshll.u32 %s539_s15, 7 }
  0x1f   : > { %s635_s9 = scalar_lea.hbm %s687_s0, %s368_s6  ;;  %s149_s10 = scalar_lea.vmem [#allocation2], %s367_s5 }
  0x20   : > { %s156_s11 = sshll.u32 %s149_s10, 4  ;;  %p637_p7 = pnand %p408_p9, %p33_p10  ;;  %s157_s11 = int_to_ptr.vmem [resolvable:$true] %s156_s11 }
  0x21   : > { %s146_s19 = scalar_lea.sflag [#allocation3], %s145_s4  ;;  %s473_s20 = scalar_lea.hbm %s635_s9, 128 }
  0x22   : > { %p474_p11 = scmp.ne.s32.totalorder %s635_s9, %s473_s20  ;;  %p475_p12 = pneg %p637_p7 }
  0x23   : > { %s478_s23 = scalar_lea.hbm %s687_s0, 256  ;;  %p479_p2 = scmp.lt.s32.totalorder %s635_s9, %s687_s0 }
  0x24   : > { %p476_p13 = pnand %p475_p12, %p474_p11  ;;  %p480_p3 = scmp.lt.s32.totalorder %s478_s23, %s473_s20 }
  0x26   : > { %p477_p0 = pneg %p476_p13  ;;  %p481_p6 = por %p480_p3, %p479_p2 }
  0x28   : > { %p482_p8 = pnand %p481_p6, %p477_p0 }
  0x2a   : > { %485 = shalt.err (!%p482_p8)
}
  0x2b   : > { %s486_s26 = scalar_lea.vmem %s157_s11, 128  ;;  %s544_s27 = smov [#allocation2]  }
  0x2c   : > { %p487_p9 = scmp.ne.s32.totalorder %s157_s11, %s486_s26  ;;  %s491_s28 = sshll.u32 %s544_s27, 4  ;;  %s492_s28 = int_to_ptr.vmem [resolvable:$false] %s491_s28 }
  0x2d   : > { %s493_s29 = scalar_lea.vmem %s492_s28, 256  ;;  %p494_p11 = scmp.lt.s32.totalorder %s157_s11, %s492_s28 }
  0x2e   : > { %p489_p10 = pnand %p487_p9, %p475_p12  ;;  %p495_p13 = scmp.lt.s32.totalorder %s493_s29, %s486_s26 }
  0x30   : > { %p490_p1 = pneg %p489_p10  ;;  %p496_p4 = por %p495_p13, %p494_p11 }
  0x32   : > { %p497_p5 = pnand %p496_p4, %p490_p1 }
  0x34   : > { %500 = shalt.err (!%p497_p5)
}
  0x35   : > { %406 = dma.hbm_to_vmem [thread:$0]  (!%p637_p7), %s635_s9, 128, %s157_s11, %s146_s19  }
  0x36   : > { %p698_p0 = scmp.ne.s32.totalorder %s695_s18, 0 }
  0x37   : > { %s167_s4 = sand.u32 (!%p698_p0), 1, %s531_s13   ;;  %p699_p12 = scmp.ne.s32.totalorder (!%p698_p0), %s694_s17, 0 }
  0x38   : > { %165 = sbr.rel (%p698_p0) target bundleno = 270 (0x10e), region = 32  ;;  %s370_s5 = sshll.u32 (!%p698_p0), %s167_s4, 3 }
  0x39   : > { %s168_s6 = scalar_lea.sflag (!%p698_p0), [#allocation3], %s167_s4  ;;  %s171_s7 = scalar_lea.vmem (!%p698_p0), [#allocation2], %s370_s5 }
  0x3d   : > { %518 = dma.done.wait (%p699_p12), %s168_s6, 128  }
  0x3e   : > { %520 = vsyncadd (%p699_p12), %s168_s6, 4294967168  ;;  %p700_p1 = scmp.eq.s32.totalorder %s586_s16, 0 }
  0x40   : > { %522 = dma.done.wait (%p700_p1), [#allocation5], 512   ;;  %p701_p4 = pmov %p700_p1 }
  0x41   : > { %v545_v0 = vmov 0.0   ;;  %vm546_vm0 = vmmov 0   ;;  %v205_v1 = vld [vmem:[#allocation4 + $0x18] sm:$0xff]  ;;  %v204_v2 = vld [vmem:[#allocation4 + $0x10] sm:$0xff]  ;;  %v203_v3 = vld [vmem:[#allocation4 + $0x8] sm:$0xff]  ;;  %vm213_vm1 = vcmask 261120  }
  0x42   : > { %524 = vsyncadd (%p701_p4), [#allocation5], 4294966784  ;;  %382 = vmatprep.subr.mxu0 %v545_v0  ;;  %390 = vmatprep.mubr.msk.f32.mxu0 %vm546_vm0, %v545_v0  ;;  %v202_v4 = vld [vmem:[#allocation4] sm:$0xff]  ;;  %v201_v5 = vld [vmem:[%s171_s7] sm:$0xff]  ;;  %p197_p5 = scmp.lt.s32.totalorder %s586_s16, 1 }
  0x43   : > { %383 = vmatpush3.msra.mxu0 %v205_v1  ;;  %v373_v6 = vld [vmem:[%s689_s2] ss:$0 sm:$0xff] }
  0x44   : > { %384 = vmatprep.subr.mxu0 %v545_v0  ;;  %s707_s16 = smov (!%p197_p5, %s586_s16), 1 }
  0x45   : > { %385 = vmatpush3.msra.mxu0 %v204_v2  ;;  %s372_s17 = sshll.u32 %s707_s16, 3 }
  0x46   : > { %386 = vmatprep.subr.mxu0 %v545_v0  ;;  %s200_s11 = scalar_lea.vmem %s690_s3, %s372_s17 }
  0x47   : > { %387 = vmatpush3.msra.mxu0 %v203_v3 }
  0x48   : > { %388 = vmatprep.subr.mxu0 %v545_v0 }
  0x49   : > { %389 = vmatpush3.msra.mxu0 %v202_v4 }
  0x4a   : > { %391 = vmatmul.mubr.msk.f32.vlgmr.msra.gmra.mxu0 %vm213_vm1, %v201_v5 }
 0x10a   : > { %v283_v7 = vpop.f32.mrf.mxu0 }
 0x10b   : > { %v284_v8 = vadd.f32 %v373_v6, %v283_v7 }
 0x10c   : > { %v392_v9 = vpop.f32.mrf.mxu0 }
 0x10d   : > { %287 = vst.msk [vmem:[%s200_s11] sm:$0xff] %vm213_vm1, %v284_v8 }
 0x10e PF: > { %p14_p7 = scmp.ge.s32.totalorder %s611_s22, 4   ;;  %s702_s12 = smov %s531_s13 }
 0x10f   : > { %s703_s13 = smov %s535_s14  ;;  %s704_s14 = smov %s628_s30 }
 0x110   : > { %s705_s15 = smov %s611_s22  ;;  %16 = sbr.rel (!%p14_p7) target bundleno = 4 (0x4), region = 76 }
 0x115   :  { %307 = vsyncpa [#allocation3], 1 }
 0x116   :  { %309 = vsyncpa [#allocation3 + $0x1], 1 }
 0x117   :  { %310 = vsyncpa [#allocation5], 1 }

</bundles_post_ra>
